<compile_context>
chip_gen: v7x
topology: tpu7x:2x2x1
jax: 0.10.0
libtpu: 0.0.40
codegen_flags: <defaults>
</compile_context>

<pallas_src>
import functools

import jax
import jax.numpy as jnp
from jax.experimental import pallas as pl
from jax.experimental.pallas import tpu as pltpu


# ------------------------------ helpers --------------------------------------

def _vmem_cap_bytes():
    """Generation-aware VMEM budget cap (v7x has 64 MiB/TC, v5e/v6e 128 MiB)."""
    try:
        kind = jax.devices()[0].device_kind.lower()
    except Exception:  # pragma: no cover - defensive
        kind = ""
    return (48 << 20) if "v7" in kind else (96 << 20)


def _largest_divisor_tile(n, cap, step):
    """Largest multiple of `step` that divides `n` and is <= cap (or None)."""
    t = (min(cap, n) // step) * step
    while t >= step and n % t:
        t -= step
    return t if t >= step else None


def _pick_batch_tile(B, max_tile=1024):
    """Pick the pass-2 batch tile.

    Prefers: >=2 (even) grid steps so v7x's two TensorCores both get work,
    multiples of 16 (bf16 sublane packing), and tiles as large as possible
    (the kernel is DMA / per-step-overhead bound, not compute bound).
    """
    for step in (16, 8):
        if B % (2 * step) == 0:
            t = _largest_divisor_tile(B // 2, min(max_tile, B // 2), step)
            if t:
                return t
    for step in (16, 8):
        if B % step == 0:
            t = _largest_divisor_tile(B, min(max_tile, B), step)
            if t:
                return t
    return B  # awkward batch size: single full-batch step


# ----------------------------- pass 1: column mean ---------------------------

def _col_mean_kernel(x_ref, mean_ref, *, inv_n):
    i = pl.program_id(0)

    @pl.when(i == 0)
    def _():
        mean_ref[...] = jnp.zeros_like(mean_ref)

    mean_ref[...] += jnp.sum(x_ref[...].astype(jnp.float32), axis=0,
                             keepdims=True)

    @pl.when(i == pl.num_programs(0) - 1)
    def _():
        mean_ref[...] *= inv_n


def _batch_col_mean(x):
    """Full-batch column mean of a bf16 (B, D) array, accumulated in f32."""
    B, D = x.shape
    bytes_per_row = D * x.dtype.itemsize
    max_rows = max(8, (8 << 20) // max(1, bytes_per_row))   # ~8 MiB per buffer
    if B <= max_rows:
        tile = B
    else:
        tile = None
        for step in (16, 8):
            if B % step == 0:
                tile = _largest_divisor_tile(B, min(max_rows, B), step)
                if tile:
                    break
        if tile is None:
            # Awkward batch sizes: XLA's reduce is already near HBM roofline.
            return jnp.mean(x.astype(jnp.float32), axis=0, keepdims=True)
    nb = B // tile
    vmem_limit = int(min(max(4 * tile * bytes_per_row + (1 << 20), 32 << 20),
                         _vmem_cap_bytes()))
    return pl.pallas_call(
        functools.partial(_col_mean_kernel, inv_n=1.0 / B),
        out_shape=jax.ShapeDtypeStruct((1, D), jnp.float32),
        grid=(nb,),
        in_specs=[pl.BlockSpec((tile, D), lambda i: (i, 0))],
        out_specs=pl.BlockSpec((1, D), lambda i: (0, 0)),
        compiler_params=pltpu.CompilerParams(
            dimension_semantics=("arbitrary",),
            vmem_limit_bytes=vmem_limit),
    )(x)


# ----------------------------- pass 2: fused MLP ------------------------------

def _apply_act(h, is_relu):
    if is_relu:
        return jnp.maximum(h, 0.0)
    # Sigmoid via exp on the EUP + approximate reciprocal (EUP slot).
    return pl.reciprocal(1.0 + jnp.exp(-h), approx=True)


def _disc_kernel(*refs, acts, out_dim):
    # refs = (x, w0, b0_eff, w1, b1, ..., out)
    x_ref = refs[0]
    out_ref = refs[-1]
    layer_refs = refs[1:-1]
    n_layers = len(layer_refs) // 2

    h = x_ref[...]                       # (TB, D) bf16, straight into the MXU
    for li in range(n_layers):
        w = layer_refs[2 * li][...]      # bf16 (in, out)
        b = layer_refs[2 * li + 1][...]  # f32  (1, out)
        h = jnp.dot(h, w, preferred_element_type=jnp.float32) + b
        h = _apply_act(h, acts[li])
        if li + 1 < n_layers:
            h = h.astype(jnp.bfloat16)

    # Final store: only the real columns (lane-padded weight columns are
    # compute-only in VMEM); the HBM output is the true (B, out_dim) array.
    out_ref[...] = h[:, :out_dim].astype(out_ref.dtype)


def discriminator_forward(x, params, hidden_dim, *, batch_tile=None):
    """Fused med_gan Discriminator forward.

    x:      (B, data_dim) float32
    params: list of (W, b) with W (in, out) (transpose of nn.Linear.weight)
            and b (1, out)
    """
    x = jnp.asarray(x, jnp.float32)
    B, D = x.shape
    hidden_dim = tuple(int(d) for d in hidden_dim)
    n_layers = len(hidden_dim)
    assert len(params) == n_layers
    out_dim = hidden_dim[-1]

    if batch_tile is None:
        batch_tile = _pick_batch_tile(B)
    assert B % batch_tile == 0, "batch must be divisible by batch_tile"
    nb = B // batch_tile

    params = [(jnp.asarray(w, jnp.float32), jnp.asarray(b, jnp.float32))
              for w, b in params]

    # --- pass 1: full-batch column mean (must cover the whole batch). -------
    xb = x.astype(jnp.bfloat16)          # cast once; both passes stream bf16
    mean = _batch_col_mean(xb)           # (1, D) f32

    # --- hoist: b0_eff = b0 + mean @ W0[D:]  (concat elimination, done once).
    w0, b0 = params[0]
    w0a = w0[:D].astype(jnp.bfloat16)
    w0b = w0[D:].astype(jnp.bfloat16)
    b0_eff = jnp.dot(mean.astype(jnp.bfloat16), w0b,
                     preferred_element_type=jnp.float32) + b0

    flat = [w0a, b0_eff]
    for w, b in params[1:]:
        flat.extend([w.astype(jnp.bfloat16), b])

    # Pad the LAST layer's W/b to a lane multiple (VMEM-resident only; the
    # kernel slices the real columns back out before the store).
    out_pad = -(-out_dim // 128) * 128
    if out_pad != out_dim:
        flat[-2] = jnp.pad(flat[-2], ((0, 0), (0, out_pad - out_dim)))
        flat[-1] = jnp.pad(flat[-1], ((0, 0), (0, out_pad - out_dim)))

    acts = tuple(d > 1 for d in hidden_dim)   # True -> ReLU, False -> Sigmoid

    # --- VMEM budget: double-buffered x/out tiles + resident weights + temps.
    act_max = max([D, out_pad] + list(hidden_dim))
    io = 2 * (batch_tile * D * 2 + batch_tile * out_dim * 4)
    residents = 2 * sum(int(a.size) * a.dtype.itemsize for a in flat)
    temps = 6 * batch_tile * act_max * 4
    vmem_limit = int(min(max(2 * (io + residents + temps), 32 << 20),
                         _vmem_cap_bytes()))

    def resident(arr):
        return pl.BlockSpec(arr.shape, lambda i: (0,) * arr.ndim)

    in_specs = ([pl.BlockSpec((batch_tile, D), lambda i: (i, 0))]
                + [resident(a) for a in flat])

    return pl.pallas_call(
        functools.partial(_disc_kernel, acts=acts, out_dim=out_dim),
        out_shape=jax.ShapeDtypeStruct((B, out_dim), jnp.float32),
        grid=(nb,),
        in_specs=in_specs,
        out_specs=pl.BlockSpec((batch_tile, out_dim), lambda i: (i, 0)),
        compiler_params=pltpu.CompilerParams(
            dimension_semantics=("parallel",),
            vmem_limit_bytes=vmem_limit),
    )(xb, *flat)


# ----------------------------- reference & demo -------------------------------

def init_params(key, data_dim, hidden_dim):
    """Deterministic synthetic parameters (shapes match the PyTorch module)."""
    params = []
    dim = data_dim * 2
    for item in hidden_dim:
        key, kw, kb = jax.random.split(key, 3)
        scale = 1.0 / jnp.sqrt(jnp.float32(dim))
        w = jax.random.uniform(kw, (dim, item), jnp.float32, -scale, scale)
        b = jax.random.uniform(kb, (1, item), jnp.float32, -scale, scale)
        params.append((w, b))
        dim = item
    return params


def reference_forward(x, params, hidden_dim):
    """Pure-JAX reference mirroring the kernel's bf16 inputs / f32 accumulate."""
    xb32 = x.astype(jnp.bfloat16).astype(jnp.float32)
    mean = jnp.mean(xb32, axis=0, keepdims=True)
    h = jnp.concatenate([xb32, jnp.broadcast_to(mean, xb32.shape)], axis=1)
    for (w, b), out in zip(params, hidden_dim):
        h = jnp.dot(h.astype(jnp.bfloat16), w.astype(jnp.bfloat16),
                    preferred_element_type=jnp.float32) + b
        h = jnp.maximum(h, 0.0) if out > 1 else jax.nn.sigmoid(h)
    return h


if __name__ == "__main__":
    batch = 64
    data_dim = 16
    hidden_dim = (32, 16, 1)   # med_gan style: ReLU, ReLU, Sigmoid

    key = jax.random.PRNGKey(0)
    key, kx = jax.random.split(key)
    x = jax.random.normal(kx, (batch, data_dim), jnp.float32)
    params = init_params(key, data_dim, hidden_dim)

    out = discriminator_forward(x, params, hidden_dim)
    out = jax.block_until_ready(out)

    ref = reference_forward(x, params, hidden_dim)
    assert out.shape == (batch, hidden_dim[-1])
    # Tolerance accounts for bf16 MXU inputs and the approximate EUP reciprocal.
    assert jnp.allclose(out, ref, atol=1e-2, rtol=1e-2), "mismatch vs. reference"

    print("KERNEL_OK")
</pallas_src>

<mosaic_0001>
module attributes {stable_mosaic.version = 11 : i64} {
  func.func @_col_mean_kernel(%arg0: i32, %arg1: memref<64x16xbf16, #tpu.memory_space<vmem>>, %arg2: memref<1x16xf32, #tpu.memory_space<vmem>>) attributes {dimension_semantics = [#tpu.dimension_semantics<arbitrary>], iteration_bounds = array<i64: 1>, scalar_prefetch = 0 : i64, scratch_operands = 0 : i64, tpu.core_type = #tpu.core_type<tc>, window_params = [{transform_indices = @transform_0, window_bounds = array<i64: 64, 16>}, {pipeline_mode = #tpu.pipeline_mode<synchronous>, transform_indices = @transform_1, window_bounds = array<i64: 1, 16>}]} {
    %c0_i32 = arith.constant 0 : i32
    %0 = arith.cmpi eq, %arg0, %c0_i32 : i32
    %1 = arith.extui %0 : i1 to i32
    %c0_i32_0 = arith.constant 0 : i32
    %2 = arith.cmpi ne, %1, %c0_i32_0 : i32
    scf.if %2 {
      %cst_8 = arith.constant 0.000000e+00 : f32
      %13 = vector.broadcast %cst_8 : f32 to vector<1x16xf32>
      %c0_9 = arith.constant 0 : index
      %c0_10 = arith.constant 0 : index
      %14 = vector.load %arg2[%c0_9, %c0_10] : memref<1x16xf32, #tpu.memory_space<vmem>>, vector<1x16xf32>
      tpu.vector_store %arg2[%c0_9, %c0_10], %13 {strides = array<i32>} : memref<1x16xf32, #tpu.memory_space<vmem>>, vector<1x16xf32>,
    } else {
    }
    %c0 = arith.constant 0 : index
    %c0_1 = arith.constant 0 : index
    %3 = vector.load %arg2[%c0, %c0_1] : memref<1x16xf32, #tpu.memory_space<vmem>>, vector<1x16xf32>
    %c0_2 = arith.constant 0 : index
    %c0_3 = arith.constant 0 : index
    %4 = vector.load %arg1[%c0_2, %c0_3] : memref<64x16xbf16, #tpu.memory_space<vmem>>, vector<64x16xbf16>
    %5 = arith.extf %4 : vector<64x16xbf16> to vector<64x16xf32>
    %cst = arith.constant dense<0.000000e+00> : vector<16xf32>
    %6 = vector.multi_reduction <add>, %5, %cst [0] : vector<64x16xf32> to vector<16xf32>
    %7 = vector.shape_cast %6 : vector<16xf32> to vector<1x16xf32>
    %8 = arith.addf %3, %7 : vector<1x16xf32>
    %c0_4 = arith.constant 0 : index
    %c0_5 = arith.constant 0 : index
    %9 = vector.load %arg2[%c0_4, %c0_5] : memref<1x16xf32, #tpu.memory_space<vmem>>, vector<1x16xf32>
    tpu.vector_store %arg2[%c0_4, %c0_5], %8 {strides = array<i32>} : memref<1x16xf32, #tpu.memory_space<vmem>>, vector<1x16xf32>,
    %c0_i32_6 = arith.constant 0 : i32
    %10 = arith.cmpi eq, %arg0, %c0_i32_6 : i32
    %11 = arith.extui %10 : i1 to i32
    %c0_i32_7 = arith.constant 0 : i32
    %12 = arith.cmpi ne, %11, %c0_i32_7 : i32
    scf.if %12 {
      %c0_8 = arith.constant 0 : index
      %c0_9 = arith.constant 0 : index
      %13 = vector.load %arg2[%c0_8, %c0_9] : memref<1x16xf32, #tpu.memory_space<vmem>>, vector<1x16xf32>
      %cst_10 = arith.constant 1.562500e-02 : f32
      %14 = vector.broadcast %cst_10 : f32 to vector<1x16xf32>
      %15 = arith.mulf %13, %14 : vector<1x16xf32>
      %c0_11 = arith.constant 0 : index
      %c0_12 = arith.constant 0 : index
      %16 = vector.load %arg2[%c0_11, %c0_12] : memref<1x16xf32, #tpu.memory_space<vmem>>, vector<1x16xf32>
      tpu.vector_store %arg2[%c0_11, %c0_12], %15 {strides = array<i32>} : memref<1x16xf32, #tpu.memory_space<vmem>>, vector<1x16xf32>,
    } else {
    }
    return
  }
  func.func @transform_0(%arg0: i32) -> (i32, i32) {
    %c0_i32 = arith.constant 0 : i32
    %c0_i32_0 = arith.constant 0 : i32
    return %arg0, %c0_i32 : i32, i32
  }
  func.func @transform_1(%arg0: i32) -> (i32, i32) {
    %c0_i32 = arith.constant 0 : i32
    %c0_i32_0 = arith.constant 0 : i32
    %c0_i32_1 = arith.constant 0 : i32
    return %c0_i32, %c0_i32_0 : i32, i32
  }
}

</mosaic_0001>

<bundles_post_ra>
// kernel: tpu_custom_call.1
= control target key start
LH: loop header
LB: loop body
LE: loop exit
PB: predicated region body
PF: predicated region fallthrough
CT: control target
= control target key end

     0   :  { %vm13_vm0 = vcmask 122880   ;;  %vm32_vm1 = vcmask 130048   ;;  %v122_v3 = vmov 0.0   ;;  %s169_s0 = inlined_call_operand.vmem [shape: bf16[64,16], index: 0, kind: input, shape index: {}]   ;;  %s170_s1 = inlined_call_operand.hbm [shape: f32[1,16], index: 1, kind: output, shape index: {}]  }
   0x1   :  { %v78_v0 = vld [vmem:[%s169_s0] sm:$0xff]   ;;  %v93_v1 = vld [vmem:[%s169_s0 + $0x8] sm:$0xff]   ;;  %v94_v2 = vld [vmem:[%s169_s0 + $0x10] sm:$0xff]   ;;  %14 = vst.msk [vmem:[#allocation2] sm:$0x1] %vm13_vm0, %v122_v3 }
   0x2   :  { %v79_v4 = vunpack.c.l.bf16 %v78_v0  ;;  %v80_v5 = vunpack.c.h.bf16 %v78_v0  ;;  %v83_v6 = vunpack.c.l.bf16 %v93_v1  ;;  %v84_v7 = vunpack.c.h.bf16 %v93_v1 }
   0x3   :  { %6 = vsyncpa [#allocation3], 0  ;;  %v87_v8 = vunpack.c.l.bf16 %v94_v2  ;;  %v95_v12 = vld [vmem:[%s169_s0 + $0x18] sm:$0xff]   ;;  %v88_v14 = vunpack.c.h.bf16 %v94_v2  ;;  %s123_s0 = smov [#allocation2]  }
   0x4   :  { %v33_v9 = vsel %vm32_vm1, %v79_v4, 0.0  ;;  %v34_v10 = vsel %vm32_vm1, %v80_v5, 0.0  ;;  %v36_v11 = vsel %vm32_vm1, %v83_v6, 0.0  ;;  %v38_v15 = vsel %vm32_vm1, %v84_v7, 0.0  ;;  %s69_s14 = sshll.u32 %s123_s0, 4  ;;  %s70_s14 = int_to_ptr.vmem [resolvable:$true] %s69_s14 }
   0x5   :  { %v35_v13 = vadd.f32 %v34_v10, %v33_v9  ;;  %v91_v17 = vunpack.c.l.bf16 %v95_v12  ;;  %v40_v18 = vsel %vm32_vm1, %v87_v8, 0.0  ;;  %v92_v20 = vunpack.c.h.bf16 %v95_v12  ;;  %s98_s15 = scalar_lea.vmem %s70_s14, 16  ;;  %s102_s16 = scalar_lea.vmem %s70_s14, 32 }
   0x6   :  { %v42_v21 = vsel %vm32_vm1, %v88_v14, 0.0  ;;  %p99_p0 = scmp.ne.s32.totalorder %s70_s14, %s98_s15  ;;  %p103_p1 = scmp.lt.s32.totalorder %s70_s14, %s70_s14 }
   0x7   :  { %v37_v16 = vadd.f32 %v36_v11, %v35_v13  ;;  %v44_v23 = vsel %vm32_vm1, %v91_v17, 0.0  ;;  %v46_v25 = vsel %vm32_vm1, %v92_v20, 0.0  ;;  %p104_p2 = scmp.lt.s32.totalorder %s102_s16, %s98_s15 }
   0x8   :  { %v15_v33 = vld [vmem:[#allocation2] sm:$0x1] }
   0x9   :  { %v39_v19 = vadd.f32 %v38_v15, %v37_v16  ;;  %p105_p3 = por %p104_p2, %p103_p1 }
   0xb   :  { %v41_v22 = vadd.f32 %v40_v18, %v39_v19  ;;  %p106_p4 = pnand %p105_p3, %p99_p0 }
   0xd   :  { %v43_v24 = vadd.f32 %v42_v21, %v41_v22 }
   0xf   :  { %v45_v26 = vadd.f32 %v44_v23, %v43_v24 }
  0x11   :  { %v47_v27 = vadd.f32 %v46_v25, %v45_v26 }
  0x13   :  { %v48_v28 = vrot.slane %v47_v27, 4 }
  0x15   :  { %v49_v29 = vadd.f32 %v48_v28, %v47_v27 }
  0x17   :  { %v50_v30 = vrot.slane %v49_v29, 2 }
  0x19   :  { %v51_v31 = vadd.f32 %v50_v30, %v49_v29 }
  0x1b   :  { %v52_v32 = vrot.slane %v51_v31, 1 }
  0x1d   :  { %v53_v34 = vadd.f32 %v52_v32, %v51_v31 }
  0x1f   :  { %v54_v35 = vadd.f32 %v53_v34, %v15_v33 }
  0x21   :  { %56 = vst.msk [vmem:[#allocation2] sm:$0x1] %vm13_vm0, %v54_v35 }
  0x28   :  { %v60_v36 = vld [vmem:[#allocation2] sm:$0x1] }
  0x29   :  { %v61_v37 = vmul.f32 0.015625, %v60_v36 }
  0x2b   :  { %62 = vst.msk [vmem:[#allocation2] sm:$0x1] %vm13_vm0, %v61_v37 }
  0x2c   :  { %109 = shalt.err (!%p106_p4)
}
  0x2d   :  { %s110_s19 = scalar_lea.hbm %s170_s1, 16 }
  0x2e   :  { %p111_p5 = scmp.ne.s32.totalorder %s170_s1, %s110_s19  ;;  %p114_p6 = scmp.lt.u32.totalorder %s110_s19, %s170_s1 }
  0x30   :  { %p116_p7 = pnand %p114_p6, %p111_p5 }
  0x32   :  { %119 = shalt.err (!%p116_p7)
}
  0x33   :  { %72 = dma.vmem_to_hbm [thread:$0]  %s70_s14, 16, %s170_s1, [#allocation3]  }
  0x34   :  { %120 = dma.done.wait [#allocation3], 16  }
  0x35   :  { %121 = vsyncadd [#allocation3], 4294967280 }
  0x36   :  { %76 = vsyncpa [#allocation3], 1 }

</bundles_post_ra>
